<compile_context>
chip_gen: v7x
topology: tpu7x:2x2x1
jax: 0.10.0
libtpu: 0.0.40
codegen_flags: <defaults>
</compile_context>

<pallas_src>
import functools

import jax
import jax.numpy as jnp
from jax import lax
from jax.experimental import pallas as pl
from jax.experimental.pallas import tpu as pltpu


def _round_up(x: int, m: int) -> int:
    return (x + m - 1) // m * m


# --------------------------------------------------------------------------- #
# Kernel 1: m1 / m2 projections (computed once, shared by every row tile).
# --------------------------------------------------------------------------- #
def _project_kernel(e1_ref, e2_ref, w1_ref, b1_ref, w2_ref, b2_ref,
                    m1_ref, m2_ref, *, alpha: float):
    # nn.Linear stores W as (out, in); contracting dim 1 of x with dim 1 of W
    # is exactly x @ W^T.
    dn = (((1,), (1,)), ((), ()))
    m1 = jnp.tanh(alpha * (lax.dot_general(e1_ref[...], w1_ref[...], dn,
                                           preferred_element_type=jnp.float32)
                           + b1_ref[...]))
    m2 = jnp.tanh(alpha * (lax.dot_general(e2_ref[...], w2_ref[...], dn,
                                           preferred_element_type=jnp.float32)
                           + b2_ref[...]))
    m1_ref[...] = m1.astype(m1_ref.dtype)   # bf16 for the MXU adjacency matmul
    m2_ref[...] = m2.astype(m2_ref.dtype)


# --------------------------------------------------------------------------- #
# Kernel 2: adjacency + per-row top-k mask, row-tiled over the output.
# --------------------------------------------------------------------------- #
def _adj_topk_kernel(m1_ref, m2_ref, adj_ref, *, alpha: float, k: int,
                     n_valid: int, seed: int):
    # s = m1_tile @ m2^T  (bf16 inputs, f32 accumulate on the MXU)
    dn = (((1,), (1,)), ((), ()))
    s = lax.dot_general(m1_ref[...], m2_ref[...], dn,
                        preferred_element_type=jnp.float32)          # (TM, Np)
    adj = jnp.maximum(jnp.tanh(alpha * s), 0.0)

    if k:
        rows, cols = adj.shape
        col = lax.broadcasted_iota(jnp.int32, (rows, cols), 1)
        row = lax.broadcasted_iota(jnp.int32, (rows, cols), 0) + pl.program_id(0) * rows

        # ---- tie-break noise: hash(row, col, seed) -> U[0,1) via bit trick ----
        # TODO(synk): torch.rand_like uses the framework PRNG; a counter-based
        # integer hash stands in for it here (deterministic, tile-invariant).
        h = (row * jnp.int32(cols) + col).astype(jnp.uint32)
        h = h ^ jnp.uint32(seed & 0xFFFFFFFF)
        h = h * jnp.uint32(0x9E3779B1)
        h = h ^ (h >> 15)
        h = h * jnp.uint32(0x85EBCA6B)
        h = h ^ (h >> 13)
        h = h * jnp.uint32(0xC2B2AE35)
        h = h ^ (h >> 16)
        ubits = (h >> 9) | jnp.uint32(0x3F800000)                    # [1, 2)
        u = lax.bitcast_convert_type(ubits, jnp.float32) - 1.0       # [0, 1)

        work = adj + 0.01 * u                                        # >= 0, finite

        # int32 sort key: for non-negative f32 the raw bit pattern is order
        # preserving.  Replace the low `bbits` mantissa bits with a column
        # tie-break so all live keys in a row are pairwise distinct -> a single
        # max-reduction selects exactly one element per row per iteration.
        bbits = max(1, (max(n_valid, 2) - 1).bit_length())
        low_mask = (1 << bbits) - 1
        wbits = lax.bitcast_convert_type(work, jnp.int32)
        live_key = (wbits & jnp.int32(~low_mask)) | \
                   (jnp.int32(low_mask) - (col & jnp.int32(low_mask)))
        dead_key = jnp.int32(-(2 ** 31)) + col                       # < 0, all distinct
        key = jnp.where(col < n_valid, live_key, dead_key)           # padded cols dead

        mask = jnp.zeros_like(adj)
        for _ in range(k):                       # k is tiny -> static unroll
            rowmax = jnp.max(key, axis=1, keepdims=True)             # one XLU reduce
            sel = key == rowmax
            mask = jnp.where(sel, 1.0, mask)
            key = jnp.where(sel, dead_key, key)                      # knock out pick
        adj = adj * mask

    adj_ref[...] = adj


# --------------------------------------------------------------------------- #
# Wrapper: gather / pad / two pallas_calls / slice.
# --------------------------------------------------------------------------- #
def directed_a_forward(idx, e1_w, e2_w, w1, b1, w2, b2, *, alpha: float, k: int,
                       seed: int = 0):
    n = int(idx.shape[0])
    w = int(e1_w.shape[1])
    k_eff = min(int(k), n)

    # Embedding gathers are glue (done in JAX); weights passed as stored (no .T).
    e1_sel = e1_w[idx].astype(jnp.float32)
    e2_sel = e2_w[idx].astype(jnp.float32)
    b1r = b1.reshape(1, w).astype(jnp.float32)
    b2r = b2.reshape(1, w).astype(jnp.float32)
    w1f = w1.astype(jnp.float32)
    w2f = w2.astype(jnp.float32)

    # Lane-dense padding: adjacency rows/cols padded to a multiple of 128.
    np_ = _round_up(n, 128)
    e1p = jnp.pad(e1_sel, ((0, np_ - n), (0, 0)))
    e2p = jnp.pad(e2_sel, ((0, np_ - n), (0, 0)))

    vmem = pl.BlockSpec(memory_space=pltpu.MemorySpace.VMEM)

    # --- kernel 1: m1 / m2 once, bf16 outputs ---
    m1, m2 = pl.pallas_call(
        functools.partial(_project_kernel, alpha=float(alpha)),
        out_shape=(jax.ShapeDtypeStruct((np_, w), jnp.bfloat16),
                   jax.ShapeDtypeStruct((np_, w), jnp.bfloat16)),
        in_specs=[vmem, vmem, vmem, vmem, vmem, vmem],
        out_specs=(vmem, vmem),
    )(e1p, e2p, w1f, b1r, w2f, b2r)

    # --- kernel 2: row-tiled adjacency + top-k ---
    # Pick the biggest row tile whose live f32 temporaries (~10x tile) plus the
    # double-buffered output (2x tile) stay well inside the scoped-VMEM limit.
    vmem_limit = 48 * 1024 * 1024
    budget = 36 * 1024 * 1024                    # headroom under the limit
    tm = 128
    for cand in (512, 256, 128):
        if np_ % cand == 0 and cand * np_ * 4 * 12 <= budget:
            tm = cand
            break
    grid = (np_ // tm,)

    adj_full = pl.pallas_call(
        functools.partial(_adj_topk_kernel, alpha=float(alpha), k=k_eff,
                          n_valid=n, seed=int(seed)),
        out_shape=jax.ShapeDtypeStruct((np_, np_), jnp.float32),
        grid=grid,
        in_specs=[pl.BlockSpec((tm, w), lambda i: (i, 0)),     # m1 row tile
                  pl.BlockSpec((np_, w), lambda i: (0, 0))],   # m2, resident
        out_specs=pl.BlockSpec((tm, np_), lambda i: (i, 0)),   # lane-dense adj tile
        compiler_params=pltpu.CompilerParams(
            dimension_semantics=("parallel",),                 # megacore sharding
            vmem_limit_bytes=vmem_limit),
    )(m1, m2)

    return adj_full[:n, :n]


if __name__ == "__main__":
    # Small, module-consistent shapes.
    num_sensors = 8        # N (idx length == num_sensors)
    window_size = 32       # W
    alpha = 3.0
    k = 3

    key = jax.random.PRNGKey(0)
    k1, k2, k3, k4, k5, k6 = jax.random.split(key, 6)

    e1_w = jax.random.normal(k1, (num_sensors, window_size), dtype=jnp.float32)
    e2_w = jax.random.normal(k2, (num_sensors, window_size), dtype=jnp.float32)
    bound = 1.0 / float(window_size) ** 0.5
    w1 = jax.random.uniform(k3, (window_size, window_size), jnp.float32, -bound, bound)
    b1 = jax.random.uniform(k4, (window_size,), jnp.float32, -bound, bound)
    w2 = jax.random.uniform(k5, (window_size, window_size), jnp.float32, -bound, bound)
    b2 = jax.random.uniform(k6, (window_size,), jnp.float32, -bound, bound)

    idx = jnp.arange(num_sensors, dtype=jnp.int32)

    adj = directed_a_forward(idx, e1_w, e2_w, w1, b1, w2, b2,
                             alpha=alpha, k=k, seed=0)
    adj = jax.block_until_ready(adj)

    # Structural checks (match the reference semantics).
    assert adj.shape == (num_sensors, num_sensors)
    assert bool(jnp.all(jnp.isfinite(adj)))
    assert bool(jnp.all(adj >= 0.0))
    assert bool(jnp.all(jnp.sum((adj > 0).astype(jnp.int32), axis=1) <= k))

    # Value check against a pure-JAX f32 reference of the (noise-independent)
    # unmasked adjacency at the positions the kernel kept.  Loose tolerance since
    # the kernel feeds the MXU bf16 inputs for the adjacency matmul.
    m1_ref = jnp.tanh(alpha * (e1_w[idx] @ w1.T + b1))
    m2_ref = jnp.tanh(alpha * (e2_w[idx] @ w2.T + b2))
    ref = jnp.maximum(jnp.tanh(alpha * (m1_ref @ m2_ref.T)), 0.0)
    err = jnp.where(adj > 0, jnp.abs(adj - ref), 0.0)
    assert bool(jnp.all(err <= 0.2))

    print("KERNEL_OK")
</pallas_src>

<mosaic_0001>
module attributes {stable_mosaic.version = 11 : i64} {
  func.func @_project_kernel(%arg0: memref<128x32xf32, #tpu.memory_space<vmem>>, %arg1: memref<128x32xf32, #tpu.memory_space<vmem>>, %arg2: memref<32x32xf32, #tpu.memory_space<vmem>>, %arg3: memref<1x32xf32, #tpu.memory_space<vmem>>, %arg4: memref<32x32xf32, #tpu.memory_space<vmem>>, %arg5: memref<1x32xf32, #tpu.memory_space<vmem>>, %arg6: memref<128x32xbf16, #tpu.memory_space<vmem>>, %arg7: memref<128x32xbf16, #tpu.memory_space<vmem>>) attributes {dimension_semantics = [], scalar_prefetch = 0 : i64, scratch_operands = 0 : i64, tpu.core_type = #tpu.core_type<tc>} {
    %c0 = arith.constant 0 : index
    %c0_0 = arith.constant 0 : index
    %0 = vector.load %arg0[%c0, %c0_0] : memref<128x32xf32, #tpu.memory_space<vmem>>, vector<128x32xf32>
    %c0_1 = arith.constant 0 : index
    %c0_2 = arith.constant 0 : index
    %1 = vector.load %arg2[%c0_1, %c0_2] : memref<32x32xf32, #tpu.memory_space<vmem>>, vector<32x32xf32>
    %cst = arith.constant dense<0.000000e+00> : vector<128x32xf32>
    %2 = tpu.matmul %0, %1, %cst {dimension_numbers = #tpu.dot_dimension_numbers<[1], [1], [0], [0], [0, 0, 1, 0], [], []>} : vector<128x32xf32>, vector<32x32xf32>, vector<128x32xf32> -> vector<128x32xf32>
    %c0_3 = arith.constant 0 : index
    %c0_4 = arith.constant 0 : index
    %3 = vector.load %arg3[%c0_3, %c0_4] : memref<1x32xf32, #tpu.memory_space<vmem>>, vector<1x32xf32>
    %4 = vector.broadcast %3 : vector<1x32xf32> to vector<128x32xf32>
    %5 = arith.addf %2, %4 : vector<128x32xf32>
    %cst_5 = arith.constant 3.000000e+00 : f32
    %6 = vector.broadcast %cst_5 : f32 to vector<128x32xf32>
    %7 = arith.mulf %6, %5 : vector<128x32xf32>
    %8 = math.tanh %7 : vector<128x32xf32>
    %c0_6 = arith.constant 0 : index
    %c0_7 = arith.constant 0 : index
    %9 = vector.load %arg1[%c0_6, %c0_7] : memref<128x32xf32, #tpu.memory_space<vmem>>, vector<128x32xf32>
    %c0_8 = arith.constant 0 : index
    %c0_9 = arith.constant 0 : index
    %10 = vector.load %arg4[%c0_8, %c0_9] : memref<32x32xf32, #tpu.memory_space<vmem>>, vector<32x32xf32>
    %cst_10 = arith.constant dense<0.000000e+00> : vector<128x32xf32>
    %11 = tpu.matmul %9, %10, %cst_10 {dimension_numbers = #tpu.dot_dimension_numbers<[1], [1], [0], [0], [0, 0, 1, 0], [], []>} : vector<128x32xf32>, vector<32x32xf32>, vector<128x32xf32> -> vector<128x32xf32>
    %c0_11 = arith.constant 0 : index
    %c0_12 = arith.constant 0 : index
    %12 = vector.load %arg5[%c0_11, %c0_12] : memref<1x32xf32, #tpu.memory_space<vmem>>, vector<1x32xf32>
    %13 = vector.broadcast %12 : vector<1x32xf32> to vector<128x32xf32>
    %14 = arith.addf %11, %13 : vector<128x32xf32>
    %cst_13 = arith.constant 3.000000e+00 : f32
    %15 = vector.broadcast %cst_13 : f32 to vector<128x32xf32>
    %16 = arith.mulf %15, %14 : vector<128x32xf32>
    %17 = math.tanh %16 : vector<128x32xf32>
    %18 = arith.truncf %8 : vector<128x32xf32> to vector<128x32xbf16>
    %c0_14 = arith.constant 0 : index
    %c0_15 = arith.constant 0 : index
    %19 = vector.load %arg6[%c0_14, %c0_15] : memref<128x32xbf16, #tpu.memory_space<vmem>>, vector<128x32xbf16>
    tpu.vector_store %arg6[%c0_14, %c0_15], %18 {strides = array<i32>} : memref<128x32xbf16, #tpu.memory_space<vmem>>, vector<128x32xbf16>,
    %20 = arith.truncf %17 : vector<128x32xf32> to vector<128x32xbf16>
    %c0_16 = arith.constant 0 : index
    %c0_17 = arith.constant 0 : index
    %21 = vector.load %arg7[%c0_16, %c0_17] : memref<128x32xbf16, #tpu.memory_space<vmem>>, vector<128x32xbf16>
    tpu.vector_store %arg7[%c0_16, %c0_17], %20 {strides = array<i32>} : memref<128x32xbf16, #tpu.memory_space<vmem>>, vector<128x32xbf16>,
    return
  }
}

</mosaic_0001>

<bundles_post_ra>
// kernel: tpu_custom_call.1
= control target key start
LH: loop header
LB: loop body
LE: loop exit
PB: predicated region body
PF: predicated region fallthrough
CT: control target
= control target key end

     0   :  { %vm52_vm0 = vcmask 261120   ;;  %vm618_vm2 = vcmask 257024   ;;  %s1405_s2 = inlined_call_operand.vmem [shape: f32[32,32], index: 2, kind: input, shape index: {}]   ;;  %s1406_s4 = inlined_call_operand.vmem [shape: f32[32,32], index: 4, kind: input, shape index: {}]   ;;  %s1407_s0 = inlined_call_operand.vmem [shape: f32[128,32], index: 0, kind: input, shape index: {}]   ;;  %s1408_s1 = inlined_call_operand.vmem [shape: f32[128,32], index: 1, kind: input, shape index: {}]   ;;  %s1409_s3 = inlined_call_operand.vmem [shape: f32[1,32], index: 3, kind: input, shape index: {}]   ;;  %s1410_s5 = inlined_call_operand.vmem [shape: f32[1,32], index: 5, kind: input, shape index: {}]   ;;  %s1411_s6 = inlined_call_operand.vmem [shape: bf16[128,32], index: 6, kind: output, shape index: {0}]   ;;  %s1412_s7 = inlined_call_operand.vmem [shape: bf16[128,32], index: 7, kind: output, shape index: {1}]  }
   0x1   :  { %v41_v0 = vld [vmem:[%s1405_s2] sm:$0xff]  ;;  %v42_v1 = vld [vmem:[%s1405_s2 + $0x8] sm:$0xff]  ;;  %vm1069_vm1 = vmpackc.low %vm52_vm0, %vm52_vm0 }
   0x2   :  { %v933_v3 = vpack.c.bf16 %v42_v1, %v41_v0  ;;  %v306_v4 = vld [vmem:[%s1406_s4] sm:$0xff]  ;;  %v307_v5 = vld [vmem:[%s1406_s4 + $0x8] sm:$0xff]  ;;  %v43_v6 = vld [vmem:[%s1405_s2 + $0x10] sm:$0xff] }
   0x3   :  { %v945_v7 = vpack.c.bf16 %v307_v5, %v306_v4  ;;  %v44_v8 = vld [vmem:[%s1405_s2 + $0x18] sm:$0xff]  ;;  %v308_v9 = vld [vmem:[%s1406_s4 + $0x10] sm:$0xff]  ;;  %v25_v13 = vld [vmem:[%s1407_s0] sm:$0xff] }
   0x4   :  { %v309_v10 = vld [vmem:[%s1406_s4 + $0x18] sm:$0xff]  ;;  %935 = vmatprep.subr.msk.bf16.mxu0 %vm1069_vm1, %v933_v3  ;;  %v939_v11 = vpack.c.bf16 %v44_v8, %v43_v6  ;;  %v290_v14 = vld [vmem:[%s1408_s1] sm:$0xff]  ;;  %877 = vmatprep.mubr.msk.f32.mxu0 %vm52_vm0, %v25_v13  ;;  %v26_v15 = vld [vmem:[%s1407_s0 + $0x8] sm:$0xff] }
   0x5   :  { %v951_v12 = vpack.c.bf16 %v309_v10, %v308_v9  ;;  %947 = vmatprep.subr.msk.bf16.mxu1 %vm1069_vm1, %v945_v7  ;;  %938 = vmatpush3.bf16.xpose.msk.msra.mxu0 %vm1069_vm1, %v933_v3  ;;  %v291_v16 = vld [vmem:[%s1408_s1 + $0x8] sm:$0xff]  ;;  %v27_v17 = vld [vmem:[%s1407_s0 + $0x10] sm:$0xff]  ;;  %v28_v19 = vld [vmem:[%s1407_s0 + $0x18] sm:$0xff] }
   0x6   :  { %950 = vmatpush3.bf16.xpose.msk.msra.mxu1 %vm1069_vm1, %v945_v7  ;;  %941 = vmatprep.subr.msk.bf16.mxu0 %vm1069_vm1, %v939_v11  ;;  %v292_v18 = vld [vmem:[%s1408_s1 + $0x10] sm:$0xff]  ;;  %v293_v20 = vld [vmem:[%s1408_s1 + $0x18] sm:$0xff]  ;;  %v29_v21 = vld [vmem:[%s1407_s0 + $0x20] sm:$0xff] }
   0x7   :  { %953 = vmatprep.subr.msk.bf16.mxu1 %vm1069_vm1, %v951_v12  ;;  %909 = vmatprep.mubr.msk.f32.mxu1 %vm52_vm0, %v290_v14  ;;  %v294_v22 = vld [vmem:[%s1408_s1 + $0x20] sm:$0xff]  ;;  %v30_v23 = vld [vmem:[%s1407_s0 + $0x28] sm:$0xff]  ;;  %v31_v25 = vld [vmem:[%s1407_s0 + $0x30] sm:$0xff] }
   0x8   :  { %v295_v24 = vld [vmem:[%s1408_s1 + $0x28] sm:$0xff]  ;;  %v296_v26 = vld [vmem:[%s1408_s1 + $0x30] sm:$0xff]  ;;  %v32_v27 = vld [vmem:[%s1407_s0 + $0x38] sm:$0xff] }
   0x9   :  { %v297_v28 = vld [vmem:[%s1408_s1 + $0x38] sm:$0xff]  ;;  %v33_v29 = vld [vmem:[%s1407_s0 + $0x40] sm:$0xff]  ;;  %v34_v31 = vld [vmem:[%s1407_s0 + $0x48] sm:$0xff] }
   0xa   :  { %v298_v30 = vld [vmem:[%s1408_s1 + $0x40] sm:$0xff]  ;;  %v299_v32 = vld [vmem:[%s1408_s1 + $0x48] sm:$0xff]  ;;  %v35_v33 = vld [vmem:[%s1407_s0 + $0x50] sm:$0xff] }
   0xb   :  { %v300_v34 = vld [vmem:[%s1408_s1 + $0x50] sm:$0xff]  ;;  %v36_v35 = vld [vmem:[%s1407_s0 + $0x58] sm:$0xff]  ;;  %v37_v37 = vld [vmem:[%s1407_s0 + $0x60] sm:$0xff] }
   0xc   :  { %v301_v36 = vld [vmem:[%s1408_s1 + $0x58] sm:$0xff]  ;;  %v302_v38 = vld [vmem:[%s1408_s1 + $0x60] sm:$0xff]  ;;  %v38_v39 = vld [vmem:[%s1407_s0 + $0x68] sm:$0xff] }
   0xd   :  { %944 = vmatpush3.bf16.xpose.msk.msra.mxu0 %vm1069_vm1, %v939_v11  ;;  %v303_v40 = vld [vmem:[%s1408_s1 + $0x68] sm:$0xff]  ;;  %v39_v41 = vld [vmem:[%s1407_s0 + $0x70] sm:$0xff]  ;;  %v40_v43 = vld [vmem:[%s1407_s0 + $0x78] sm:$0xff] }
   0xe   :  { %956 = vmatpush3.bf16.xpose.msk.msra.mxu1 %vm1069_vm1, %v951_v12  ;;  %v304_v42 = vld [vmem:[%s1408_s1 + $0x70] sm:$0xff]  ;;  %v305_v44 = vld [vmem:[%s1408_s1 + $0x78] sm:$0xff]  ;;  %v1238_v45 = vld [vmem:[%s1409_s3] ss:$0 sm:$0xff] }
   0xf   :  { %v1243_v46 = vld [vmem:[%s1410_s5] ss:$0 sm:$0xff] }
  0x14   :  { %878 = vmatmul.mubr.msk.f32.vlgmr.msra.gmra.mrb[0].mxu0 %vm52_vm0, %v26_v15 }
  0x15   :  { %910 = vmatmul.mubr.msk.f32.vlgmr.msra.gmra.mrb[0].mxu1 %vm52_vm0, %v291_v16  ;;  %880 = vmatprep.mubr.msk.f32.mxu0 %vm52_vm0, %v27_v17 }
  0x16   :  { %912 = vmatprep.mubr.msk.f32.mxu1 %vm52_vm0, %v292_v18 }
  0x18   :  { %881 = vmatmul.mubr.msk.f32.gmra.mrb[2].mxu0 %vm52_vm0, %v28_v19 }
  0x19   :  { %913 = vmatmul.mubr.msk.f32.gmra.mrb[2].mxu1 %vm52_vm0, %v293_v20  ;;  %883 = vmatprep.mubr.msk.f32.mxu0 %vm52_vm0, %v29_v21 }
  0x1a   :  { %915 = vmatprep.mubr.msk.f32.mxu1 %vm52_vm0, %v294_v22 }
  0x1c   :  { %884 = vmatmul.mubr.msk.f32.gmra.mrb[4].mxu0 %vm52_vm0, %v30_v23 }
  0x1d   :  { %916 = vmatmul.mubr.msk.f32.gmra.mrb[4].mxu1 %vm52_vm0, %v295_v24  ;;  %886 = vmatprep.mubr.msk.f32.mxu0 %vm52_vm0, %v31_v25 }
  0x1e   :  { %918 = vmatprep.mubr.msk.f32.mxu1 %vm52_vm0, %v296_v26 }
  0x20   :  { %887 = vmatmul.mubr.msk.f32.gmra.mrb[6].mxu0 %vm52_vm0, %v32_v27 }
  0x21   :  { %919 = vmatmul.mubr.msk.f32.gmra.mrb[6].mxu1 %vm52_vm0, %v297_v28  ;;  %889 = vmatprep.mubr.msk.f32.mxu0 %vm52_vm0, %v33_v29 }
  0x22   :  { %921 = vmatprep.mubr.msk.f32.mxu1 %vm52_vm0, %v298_v30 }
  0x24   :  { %890 = vmatmul.mubr.msk.f32.gmra.mrb[8].mxu0 %vm52_vm0, %v34_v31 }
  0x25   :  { %922 = vmatmul.mubr.msk.f32.gmra.mrb[8].mxu1 %vm52_vm0, %v299_v32  ;;  %892 = vmatprep.mubr.msk.f32.mxu0 %vm52_vm0, %v35_v33 }
  0x26   :  { %924 = vmatprep.mubr.msk.f32.mxu1 %vm52_vm0, %v300_v34 }
  0x28   :  { %893 = vmatmul.mubr.msk.f32.gmra.mrb[10].mxu0 %vm52_vm0, %v36_v35 }
  0x29   :  { %925 = vmatmul.mubr.msk.f32.gmra.mrb[10].mxu1 %vm52_vm0, %v301_v36  ;;  %895 = vmatprep.mubr.msk.f32.mxu0 %vm52_vm0, %v37_v37 }
  0x2a   :  { %927 = vmatprep.mubr.msk.f32.mxu1 %vm52_vm0, %v302_v38 }
  0x2c   :  { %896 = vmatmul.mubr.msk.f32.gmra.mrb[12].mxu0 %vm52_vm0, %v38_v39 }
  0x2d   :  { %928 = vmatmul.mubr.msk.f32.gmra.mrb[12].mxu1 %vm52_vm0, %v303_v40  ;;  %898 = vmatprep.mubr.msk.f32.mxu0 %vm52_vm0, %v39_v41 }
  0x2e   :  { %930 = vmatprep.mubr.msk.f32.mxu1 %vm52_vm0, %v304_v42 }
  0x30   :  { %899 = vmatmul.mubr.msk.f32.gmra.mrb[14].mxu0 %vm52_vm0, %v40_v43 }
  0x31   :  { %931 = vmatmul.mubr.msk.f32.gmra.mrb[14].mxu1 %vm52_vm0, %v305_v44 }
  0xe7   :  { %v879_v47 = vpop.f32.mrb[0].mxu0 }
  0xe8   :  { %v185_v48 = vadd.f32 %v879_v47, %v1238_v45  ;;  %v911_v49 = vpop.f32.mrb[0].mxu1  ;;  %v179_v50 = vpop.f32.mrb[1].mxu0 }
  0xe9   :  { %v449_v51 = vadd.f32 %v911_v49, %v1243_v46  ;;  %v180_v52 = vadd.f32 %v1238_v45, %v179_v50  ;;  %v443_v53 = vpop.f32.mrb[1].mxu1 }
  0xea   :  { %v259_v54 = vmul.f32 3.0, %v185_v48  ;;  %v444_v55 = vadd.f32 %v1243_v46, %v443_v53 }
  0xeb   :  { %v523_v56 = vmul.f32 3.0, %v449_v51  ;;  %v258_v57 = vmul.f32 3.0, %v180_v52  ;;  %v882_v58 = vpop.f32.mrb[2].mxu0 }
  0xec   :  { %957 = vtanh.f32 %v259_v54  ;;  %v522_v59 = vmul.f32 3.0, %v444_v55  ;;  %v195_v60 = vadd.f32 %v882_v58, %v1238_v45  ;;  %v914_v61 = vpop.f32.mrb[2].mxu1  ;;  %v189_v62 = vpop.f32.mrb[3].mxu0 }
  0xed   :  { %959 = vtanh.f32 %v523_v56  ;;  %v459_v63 = vadd.f32 %v914_v61, %v1243_v46  ;;  %v190_v0 = vadd.f32 %v1238_v45, %v189_v62  ;;  %v453_v1 = vpop.f32.mrb[3].mxu1 }
  0xee   :  { %961 = vtanh.f32 %v258_v57  ;;  %v261_v2 = vmul.f32 3.0, %v195_v60  ;;  %v454_v3 = vadd.f32 %v1243_v46, %v453_v1 }
  0xef   :  { %963 = vtanh.f32 %v522_v59  ;;  %v525_v4 = vmul.f32 3.0, %v459_v63  ;;  %v260_v5 = vmul.f32 3.0, %v190_v0  ;;  %v885_v6 = vpop.f32.mrb[4].mxu0 }
  0xf0   :  { %965 = vtanh.f32 %v261_v2  ;;  %v524_v7 = vmul.f32 3.0, %v454_v3  ;;  %v205_v8 = vadd.f32 %v885_v6, %v1238_v45  ;;  %v917_v9 = vpop.f32.mrb[4].mxu1  ;;  %v199_v10 = vpop.f32.mrb[5].mxu0 }
  0xf1   :  { %967 = vtanh.f32 %v525_v4  ;;  %v469_v11 = vadd.f32 %v917_v9, %v1243_v46  ;;  %v200_v12 = vadd.f32 %v1238_v45, %v199_v10  ;;  %v463_v13 = vpop.f32.mrb[5].mxu1 }
  0xf2   :  { %969 = vtanh.f32 %v260_v5  ;;  %v263_v14 = vmul.f32 3.0, %v205_v8  ;;  %v464_v15 = vadd.f32 %v1243_v46, %v463_v13 }
  0xf3   :  { %971 = vtanh.f32 %v524_v7  ;;  %v527_v16 = vmul.f32 3.0, %v469_v11  ;;  %v262_v17 = vmul.f32 3.0, %v200_v12  ;;  %v888_v18 = vpop.f32.mrb[6].mxu0 }
  0xf4   :  { %973 = vtanh.f32 %v263_v14  ;;  %v526_v19 = vmul.f32 3.0, %v464_v15  ;;  %v215_v20 = vadd.f32 %v888_v18, %v1238_v45  ;;  %v920_v21 = vpop.f32.mrb[6].mxu1  ;;  %v209_v22 = vpop.f32.mrb[7].mxu0 }
  0xf5   :  { %975 = vtanh.f32 %v527_v16  ;;  %v479_v23 = vadd.f32 %v920_v21, %v1243_v46  ;;  %v210_v24 = vadd.f32 %v1238_v45, %v209_v22  ;;  %v473_v25 = vpop.f32.mrb[7].mxu1 }
  0xf6   :  { %v958_v26 = vpop.eup %957  ;;  %977 = vtanh.f32 %v262_v17  ;;  %v265_v27 = vmul.f32 3.0, %v215_v20  ;;  %v474_v28 = vadd.f32 %v1243_v46, %v473_v25 }
  0xf7   :  { %v960_v29 = vpop.eup %959  ;;  %v798_v30 = vpack.c.bf16 %v958_v26, %v958_v26  ;;  %979 = vtanh.f32 %v526_v19  ;;  %v529_v31 = vmul.f32 3.0, %v479_v23  ;;  %v264_v32 = vmul.f32 3.0, %v210_v24  ;;  %v891_v33 = vpop.f32.mrb[8].mxu0 }
  0xf8   :  { %v962_v34 = vpop.eup %961  ;;  %v814_v35 = vpack.c.bf16 %v960_v29, %v960_v29  ;;  %981 = vtanh.f32 %v265_v27  ;;  %v528_v36 = vmul.f32 3.0, %v474_v28  ;;  %v225_v37 = vadd.f32 %v891_v33, %v1238_v45  ;;  %v923_v38 = vpop.f32.mrb[8].mxu1 }
  0xf9   :  { %v219_v39 = vpop.f32.mrb[9].mxu0  ;;  %v964_v40 = vpop.eup %963  ;;  %620 = vst.msk [vmem:[%s1411_s6 + $0x4] sm:$0xf] %vm618_vm2, %v798_v30  ;;  %v797_v41 = vpack.c.bf16 %v962_v34, %v962_v34  ;;  %983 = vtanh.f32 %v529_v31  ;;  %v489_v42 = vadd.f32 %v923_v38, %v1243_v46 }
  0xfa   :  { %v220_v43 = vadd.f32 %v1238_v45, %v219_v39  ;;  %v483_v44 = vpop.f32.mrb[9].mxu1  ;;  %v966_v47 = vpop.eup %965  ;;  %700 = vst.msk [vmem:[%s1412_s7 + $0x4] sm:$0xf] %vm618_vm2, %v814_v35  ;;  %v813_v48 = vpack.c.bf16 %v964_v40, %v964_v40  ;;  %985 = vtanh.f32 %v264_v32  ;;  %v267_v49 = vmul.f32 3.0, %v225_v37 }
  0xfb   :  { %v484_v50 = vadd.f32 %v1243_v46, %v483_v44  ;;  %v968_v51 = vpop.eup %967  ;;  %619 = vst.msk [vmem:[%s1411_s6] sm:$0xf] %vm618_vm2, %v797_v41  ;;  %v800_v52 = vpack.c.bf16 %v966_v47, %v966_v47  ;;  %987 = vtanh.f32 %v528_v36  ;;  %v531_v53 = vmul.f32 3.0, %v489_v42  ;;  %v894_v55 = vpop.f32.mrb[10].mxu0 }
  0xfc   :  { %v266_v54 = vmul.f32 3.0, %v220_v43  ;;  %v970_v56 = vpop.eup %969  ;;  %699 = vst.msk [vmem:[%s1412_s7] sm:$0xf] %vm618_vm2, %v813_v48  ;;  %v816_v57 = vpack.c.bf16 %v968_v51, %v968_v51  ;;  %989 = vtanh.f32 %v267_v49  ;;  %v235_v59 = vadd.f32 %v894_v55, %v1238_v45  ;;  %v926_v60 = vpop.f32.mrb[10].mxu1 }
  0xfd   :  { %v530_v58 = vmul.f32 3.0, %v484_v50  ;;  %v229_v61 = vpop.f32.mrb[11].mxu0  ;;  %v972_v62 = vpop.eup %971  ;;  %622 = vst.msk [vmem:[%s1411_s6 + $0xc] sm:$0xf] %vm618_vm2, %v800_v52  ;;  %v799_v63 = vpack.c.bf16 %v970_v56, %v970_v56  ;;  %991 = vtanh.f32 %v531_v53  ;;  %v499_v0 = vadd.f32 %v926_v60, %v1243_v46 }
  0xfe   :  { %v230_v1 = vadd.f32 %v1238_v45, %v229_v61  ;;  %v493_v2 = vpop.f32.mrb[11].mxu1  ;;  %v974_v3 = vpop.eup %973  ;;  %702 = vst.msk [vmem:[%s1412_s7 + $0xc] sm:$0xf] %vm618_vm2, %v816_v57  ;;  %v815_v4 = vpack.c.bf16 %v972_v62, %v972_v62  ;;  %993 = vtanh.f32 %v266_v54  ;;  %v269_v5 = vmul.f32 3.0, %v235_v59 }
  0xff   :  { %v494_v6 = vadd.f32 %v1243_v46, %v493_v2  ;;  %v976_v7 = vpop.eup %975  ;;  %621 = vst.msk [vmem:[%s1411_s6 + $0x8] sm:$0xf] %vm618_vm2, %v799_v63  ;;  %v802_v8 = vpack.c.bf16 %v974_v3, %v974_v3  ;;  %995 = vtanh.f32 %v530_v58  ;;  %v533_v9 = vmul.f32 3.0, %v499_v0  ;;  %v897_v11 = vpop.f32.mrb[12].mxu0 }
 0x100   :  { %v268_v10 = vmul.f32 3.0, %v230_v1  ;;  %v978_v12 = vpop.eup %977  ;;  %701 = vst.msk [vmem:[%s1412_s7 + $0x8] sm:$0xf] %vm618_vm2, %v815_v4  ;;  %v818_v13 = vpack.c.bf16 %v976_v7, %v976_v7  ;;  %997 = vtanh.f32 %v269_v5  ;;  %v245_v15 = vadd.f32 %v897_v11, %v1238_v45  ;;  %v929_v16 = vpop.f32.mrb[12].mxu1 }
 0x101   :  { %v532_v14 = vmul.f32 3.0, %v494_v6  ;;  %v239_v17 = vpop.f32.mrb[13].mxu0  ;;  %v980_v18 = vpop.eup %979  ;;  %624 = vst.msk [vmem:[%s1411_s6 + $0x14] sm:$0xf] %vm618_vm2, %v802_v8  ;;  %v801_v19 = vpack.c.bf16 %v978_v12, %v978_v12  ;;  %999 = vtanh.f32 %v533_v9  ;;  %v509_v20 = vadd.f32 %v929_v16, %v1243_v46 }
 0x102   :  { %v240_v21 = vadd.f32 %v1238_v45, %v239_v17  ;;  %v503_v22 = vpop.f32.mrb[13].mxu1  ;;  %v982_v23 = vpop.eup %981  ;;  %704 = vst.msk [vmem:[%s1412_s7 + $0x14] sm:$0xf] %vm618_vm2, %v818_v13  ;;  %v817_v24 = vpack.c.bf16 %v980_v18, %v980_v18  ;;  %1001 = vtanh.f32 %v268_v10  ;;  %v271_v25 = vmul.f32 3.0, %v245_v15 }
 0x103   :  { %v504_v26 = vadd.f32 %v1243_v46, %v503_v22  ;;  %v984_v27 = vpop.eup %983  ;;  %623 = vst.msk [vmem:[%s1411_s6 + $0x10] sm:$0xf] %vm618_vm2, %v801_v19  ;;  %v804_v28 = vpack.c.bf16 %v982_v23, %v982_v23  ;;  %1003 = vtanh.f32 %v532_v14  ;;  %v535_v29 = vmul.f32 3.0, %v509_v20  ;;  %v900_v31 = vpop.f32.mrb[14].mxu0 }
 0x104   :  { %v270_v30 = vmul.f32 3.0, %v240_v21  ;;  %v986_v32 = vpop.eup %985  ;;  %703 = vst.msk [vmem:[%s1412_s7 + $0x10] sm:$0xf] %vm618_vm2, %v817_v24  ;;  %v820_v33 = vpack.c.bf16 %v984_v27, %v984_v27  ;;  %1005 = vtanh.f32 %v271_v25  ;;  %v255_v35 = vadd.f32 %v900_v31, %v1238_v45  ;;  %v932_v36 = vpop.f32.mrb[14].mxu1 }
 0x105   :  { %v534_v34 = vmul.f32 3.0, %v504_v26  ;;  %v249_v37 = vpop.f32.mrb[15].mxu0  ;;  %v988_v38 = vpop.eup %987  ;;  %626 = vst.msk [vmem:[%s1411_s6 + $0x1c] sm:$0xf] %vm618_vm2, %v804_v28  ;;  %v803_v39 = vpack.c.bf16 %v986_v32, %v986_v32  ;;  %1007 = vtanh.f32 %v535_v29  ;;  %v519_v40 = vadd.f32 %v932_v36, %v1243_v46 }
 0x106   :  { %v250_v41 = vadd.f32 %v1238_v45, %v249_v37  ;;  %v513_v42 = vpop.f32.mrb[15].mxu1  ;;  %v990_v43 = vpop.eup %989  ;;  %706 = vst.msk [vmem:[%s1412_s7 + $0x1c] sm:$0xf] %vm618_vm2, %v820_v33  ;;  %v819_v44 = vpack.c.bf16 %v988_v38, %v988_v38  ;;  %1009 = vtanh.f32 %v270_v30  ;;  %v273_v47 = vmul.f32 3.0, %v255_v35 }
 0x107   :  { %v514_v48 = vadd.f32 %v1243_v46, %v513_v42  ;;  %v992_v49 = vpop.eup %991  ;;  %625 = vst.msk [vmem:[%s1411_s6 + $0x18] sm:$0xf] %vm618_vm2, %v803_v39  ;;  %v806_v50 = vpack.c.bf16 %v990_v43, %v990_v43  ;;  %1011 = vtanh.f32 %v534_v34  ;;  %v537_v45 = vmul.f32 3.0, %v519_v40 }
 0x108   :  { %v272_v51 = vmul.f32 3.0, %v250_v41  ;;  %v994_v52 = vpop.eup %993  ;;  %705 = vst.msk [vmem:[%s1412_s7 + $0x18] sm:$0xf] %vm618_vm2, %v819_v44  ;;  %v822_v53 = vpack.c.bf16 %v992_v49, %v992_v49  ;;  %1013 = vtanh.f32 %v273_v47 }
 0x109   :  { %v536_v54 = vmul.f32 3.0, %v514_v48  ;;  %v996_v46 = vpop.eup %995  ;;  %628 = vst.msk [vmem:[%s1411_s6 + $0x24] sm:$0xf] %vm618_vm2, %v806_v50  ;;  %v805_v55 = vpack.c.bf16 %v994_v52, %v994_v52  ;;  %1015 = vtanh.f32 %v537_v45 }
 0x10a   :  { %v998_v56 = vpop.eup %997  ;;  %708 = vst.msk [vmem:[%s1412_s7 + $0x24] sm:$0xf] %vm618_vm2, %v822_v53  ;;  %v821_v57 = vpack.c.bf16 %v996_v46, %v996_v46  ;;  %1017 = vtanh.f32 %v272_v51 }
 0x10b   :  { %v1000_v58 = vpop.eup %999  ;;  %627 = vst.msk [vmem:[%s1411_s6 + $0x20] sm:$0xf] %vm618_vm2, %v805_v55  ;;  %v808_v59 = vpack.c.bf16 %v998_v56, %v998_v56  ;;  %1019 = vtanh.f32 %v536_v54 }
 0x10c   :  { %v1002_v60 = vpop.eup %1001  ;;  %707 = vst.msk [vmem:[%s1412_s7 + $0x20] sm:$0xf] %vm618_vm2, %v821_v57  ;;  %v824_v61 = vpack.c.bf16 %v1000_v58, %v1000_v58 }
 0x10d   :  { %v1004_v62 = vpop.eup %1003  ;;  %630 = vst.msk [vmem:[%s1411_s6 + $0x2c] sm:$0xf] %vm618_vm2, %v808_v59  ;;  %v807_v63 = vpack.c.bf16 %v1002_v60, %v1002_v60 }
 0x10e   :  { %v1006_v0 = vpop.eup %1005  ;;  %710 = vst.msk [vmem:[%s1412_s7 + $0x2c] sm:$0xf] %vm618_vm2, %v824_v61  ;;  %v823_v1 = vpack.c.bf16 %v1004_v62, %v1004_v62 }
 0x10f   :  { %v1008_v2 = vpop.eup %1007  ;;  %629 = vst.msk [vmem:[%s1411_s6 + $0x28] sm:$0xf] %vm618_vm2, %v807_v63  ;;  %v810_v3 = vpack.c.bf16 %v1006_v0, %v1006_v0 }
 0x110   :  { %v1010_v4 = vpop.eup %1009  ;;  %709 = vst.msk [vmem:[%s1412_s7 + $0x28] sm:$0xf] %vm618_vm2, %v823_v1  ;;  %v826_v5 = vpack.c.bf16 %v1008_v2, %v1008_v2 }
 0x111   :  { %v1012_v6 = vpop.eup %1011  ;;  %632 = vst.msk [vmem:[%s1411_s6 + $0x34] sm:$0xf] %vm618_vm2, %v810_v3  ;;  %v809_v7 = vpack.c.bf16 %v1010_v4, %v1010_v4 }
 0x112   :  { %v1014_v8 = vpop.eup %1013  ;;  %712 = vst.msk [vmem:[%s1412_s7 + $0x34] sm:$0xf] %vm618_vm2, %v826_v5  ;;  %v825_v9 = vpack.c.bf16 %v1012_v6, %v1012_v6 }
 0x113   :  { %v1016_v10 = vpop.eup %1015  ;;  %631 = vst.msk [vmem:[%s1411_s6 + $0x30] sm:$0xf] %vm618_vm2, %v809_v7  ;;  %v812_v11 = vpack.c.bf16 %v1014_v8, %v1014_v8 }
 0x114   :  { %v1018_v12 = vpop.eup %1017  ;;  %711 = vst.msk [vmem:[%s1412_s7 + $0x30] sm:$0xf] %vm618_vm2, %v825_v9  ;;  %v828_v13 = vpack.c.bf16 %v1016_v10, %v1016_v10 }
 0x115   :  { %v1020_v14 = vpop.eup %1019  ;;  %634 = vst.msk [vmem:[%s1411_s6 + $0x3c] sm:$0xf] %vm618_vm2, %v812_v11  ;;  %v811_v15 = vpack.c.bf16 %v1018_v12, %v1018_v12 }
 0x116   :  { %714 = vst.msk [vmem:[%s1412_s7 + $0x3c] sm:$0xf] %vm618_vm2, %v828_v13  ;;  %v827_v16 = vpack.c.bf16 %v1020_v14, %v1020_v14 }
 0x117   :  { %633 = vst.msk [vmem:[%s1411_s6 + $0x38] sm:$0xf] %vm618_vm2, %v811_v15 }
 0x118   :  { %713 = vst.msk [vmem:[%s1412_s7 + $0x38] sm:$0xf] %vm618_vm2, %v827_v16 }

</bundles_post_ra>
